<compile_context>
chip_gen: v7x
topology: tpu7x:2x2x1
jax: 0.10.0
libtpu: 0.0.40
codegen_flags: <defaults>
</compile_context>

<pallas_src>
import math

import jax
import jax.numpy as jnp
from jax.experimental import pallas as pl
from jax.experimental.pallas import tpu as pltpu


def _focus_conv_kernel(x_ref, w_ref, s_ref, b_ref, o_ref):
    # x_ref: (K, MT)   w_ref: (C2, K)   s_ref/b_ref: (C2, 1)   o_ref: (C2, MT)
    z = jnp.dot(w_ref[...], x_ref[...], preferred_element_type=jnp.float32)  # 1x1 conv
    z = z * s_ref[...] + b_ref[...]                 # folded BatchNorm (eval mode), VPU
    sig = 1.0 / (1.0 + jnp.exp(-z))                 # SiLU = z * sigmoid(z)  (EUP exp)
    o_ref[...] = (z * sig).astype(o_ref.dtype)


def focus_forward(x, w, bn_gamma, bn_beta, bn_mean, bn_var, eps=1e-5,
                  *, max_lane_tile=8192):
    """Focus forward pass (k=1, s=1, g=1, act=SiLU, BatchNorm in eval mode).

    x:  (N, C1, H, W) float32, H and W even
    w:  (C2, 4*C1, 1, 1) conv weight (bias=False)
    bn_gamma/bn_beta/bn_mean/bn_var: (C2,) BatchNorm2d affine params + running stats
    returns (N, C2, H//2, W//2)
    """
    N, C1, H, W = x.shape
    C2 = w.shape[0]
    K = 4 * C1
    assert w.shape[1:] == (K, 1, 1), "only k=1, g=1 Focus conv is supported"
    assert H % 2 == 0 and W % 2 == 0, "Focus requires even spatial dims"
    Ho, Wo = H // 2, W // 2

    # --- space-to-depth with the exact Focus channel ordering (layout plumbing) ---
    xc = jnp.concatenate(
        [x[:, :, ::2, ::2], x[:, :, 1::2, ::2],
         x[:, :, ::2, 1::2], x[:, :, 1::2, 1::2]], axis=1)           # (N, K, Ho, Wo)
    M = N * Ho * Wo
    x2d = xc.transpose(1, 0, 2, 3).reshape(K, M)                      # (K, M) lane-dense

    # --- fold BatchNorm (eval) into a per-output-channel scale + shift ------------
    inv_std = 1.0 / jnp.sqrt(bn_var.astype(jnp.float32) + eps)
    scale = (bn_gamma * inv_std).reshape(C2, 1).astype(jnp.float32)
    shift = (bn_beta - bn_mean * bn_gamma * inv_std).reshape(C2, 1).astype(jnp.float32)
    w2d = w.reshape(C2, K).astype(jnp.float32)

    # --- lane tiling: pad M to a multiple of 128, tile up to max_lane_tile lanes ---
    m_pad = pl.cdiv(M, 128) * 128
    mt = min(m_pad, max_lane_tile)
    m_pad = pl.cdiv(m_pad, mt) * mt
    if m_pad != M:
        x2d = jnp.pad(x2d, ((0, 0), (0, m_pad - M)))
    grid = (m_pad // mt,)

    bytes_accessed = 4 * (K * m_pad + C2 * m_pad + C2 * K + 2 * C2)
    out2d = pl.pallas_call(
        _focus_conv_kernel,
        out_shape=jax.ShapeDtypeStruct((C2, m_pad), x.dtype),
        grid_spec=pltpu.PrefetchScalarGridSpec(
            num_scalar_prefetch=0,
            grid=grid,
            in_specs=[
                pl.BlockSpec((K, mt), lambda i: (0, i)),      # activation slab tile
                pl.BlockSpec((C2, K), lambda i: (0, 0)),      # conv weight (resident)
                pl.BlockSpec((C2, 1), lambda i: (0, 0)),      # BN scale
                pl.BlockSpec((C2, 1), lambda i: (0, 0)),      # BN shift
            ],
            out_specs=pl.BlockSpec((C2, mt), lambda i: (0, i)),
        ),
        compiler_params=pltpu.CompilerParams(
            dimension_semantics=("parallel",),
            vmem_limit_bytes=48 * 1024 * 1024,   # safe on v5e/v6e (128 MiB) and v7x (64 MiB)
        ),
        cost_estimate=pl.CostEstimate(
            flops=2 * C2 * K * m_pad + 4 * C2 * m_pad,
            transcendentals=C2 * m_pad,
            bytes_accessed=bytes_accessed,
        ),
    )(x2d, w2d, scale, shift)

    # un-flatten back to NCHW
    out = out2d[:, :M].reshape(C2, N, Ho, Wo).transpose(1, 0, 2, 3)   # (N, C2, Ho, Wo)
    return out


def _reference(x, w, gamma, beta, mean, var, eps=1e-5):
    """Pure-JAX replica of the PyTorch Focus forward (eval-mode BN)."""
    xc = jnp.concatenate(
        [x[:, :, ::2, ::2], x[:, :, 1::2, ::2],
         x[:, :, ::2, 1::2], x[:, :, 1::2, 1::2]], axis=1)
    C2 = w.shape[0]
    z = jnp.einsum('nkhw,ok->nohw', xc, w.reshape(C2, -1),
                   precision=jax.lax.Precision.HIGHEST)
    z = (z - mean[None, :, None, None]) / jnp.sqrt(var[None, :, None, None] + eps)
    z = z * gamma[None, :, None, None] + beta[None, :, None, None]
    return z * (1.0 / (1.0 + jnp.exp(-z)))


if __name__ == "__main__":
    c1, c2 = 4, 32
    N, H, W = 2, 16, 16

    key = jax.random.PRNGKey(0)
    kx, kw, kg, kb, km, kv = jax.random.split(key, 6)

    # Inputs rounded to bf16-representable values so the f32 MXU matmul (whose default
    # path truncates operands to bf16) is exact and comparable to the f32 reference.
    x = jax.random.normal(kx, (N, c1, H, W), jnp.float32)
    x = x.astype(jnp.bfloat16).astype(jnp.float32)
    bound = 1.0 / math.sqrt(4 * c1)
    w = jax.random.uniform(kw, (c2, 4 * c1, 1, 1), jnp.float32, -bound, bound)
    w = w.astype(jnp.bfloat16).astype(jnp.float32)

    bn_gamma = jax.random.uniform(kg, (c2,), jnp.float32, 0.5, 1.5)
    bn_beta = jax.random.normal(kb, (c2,), jnp.float32) * 0.1
    bn_mean = jax.random.normal(km, (c2,), jnp.float32) * 0.1
    bn_var = jax.random.uniform(kv, (c2,), jnp.float32, 0.5, 1.5)

    out = focus_forward(x, w, bn_gamma, bn_beta, bn_mean, bn_var)
    out = jax.block_until_ready(out)

    ref = _reference(x, w, bn_gamma, bn_beta, bn_mean, bn_var)
    assert out.shape == (N, c2, H // 2, W // 2)
    max_err = jnp.max(jnp.abs(out - ref))
    assert jnp.allclose(out, ref, atol=1e-4, rtol=1e-4), (
        f"mismatch vs reference: max abs err = {max_err:.3e}")

    print("KERNEL_OK")
</pallas_src>

<mosaic_0001>
module attributes {stable_mosaic.version = 11 : i64} {
  func.func @_focus_conv_kernel(%arg0: i32, %arg1: memref<16x128xf32, #tpu.memory_space<vmem>>, %arg2: memref<32x16xf32, #tpu.memory_space<vmem>>, %arg3: memref<32x1xf32, #tpu.memory_space<vmem>>, %arg4: memref<32x1xf32, #tpu.memory_space<vmem>>, %arg5: memref<32x128xf32, #tpu.memory_space<vmem>>) attributes {dimension_semantics = [#tpu.dimension_semantics<parallel>], iteration_bounds = array<i64: 1>, scalar_prefetch = 0 : i64, scratch_operands = 0 : i64, tpu.core_type = #tpu.core_type<tc>, window_params = [{transform_indices = @transform_0, window_bounds = array<i64: 16, 128>}, {pipeline_mode = #tpu.pipeline_mode<synchronous>, transform_indices = @transform_1, window_bounds = array<i64: 32, 16>}, {pipeline_mode = #tpu.pipeline_mode<synchronous>, transform_indices = @transform_2, window_bounds = array<i64: 32, 1>}, {pipeline_mode = #tpu.pipeline_mode<synchronous>, transform_indices = @transform_3, window_bounds = array<i64: 32, 1>}, {transform_indices = @transform_4, window_bounds = array<i64: 32, 128>}]} {
    %c0 = arith.constant 0 : index
    %c0_0 = arith.constant 0 : index
    %0 = vector.load %arg2[%c0, %c0_0] : memref<32x16xf32, #tpu.memory_space<vmem>>, vector<32x16xf32>
    %c0_1 = arith.constant 0 : index
    %c0_2 = arith.constant 0 : index
    %1 = vector.load %arg1[%c0_1, %c0_2] : memref<16x128xf32, #tpu.memory_space<vmem>>, vector<16x128xf32>
    %cst = arith.constant dense<0.000000e+00> : vector<32x128xf32>
    %2 = tpu.matmul %0, %1, %cst {dimension_numbers = #tpu.dot_dimension_numbers<[1], [0], [0], [1], [0, 0, 1, 1], [], []>} : vector<32x16xf32>, vector<16x128xf32>, vector<32x128xf32> -> vector<32x128xf32>
    %c0_3 = arith.constant 0 : index
    %c0_4 = arith.constant 0 : index
    %3 = vector.load %arg3[%c0_3, %c0_4] : memref<32x1xf32, #tpu.memory_space<vmem>>, vector<32x1xf32>
    %4 = vector.broadcast %3 : vector<32x1xf32> to vector<32x128xf32>
    %5 = arith.mulf %2, %4 : vector<32x128xf32>
    %c0_5 = arith.constant 0 : index
    %c0_6 = arith.constant 0 : index
    %6 = vector.load %arg4[%c0_5, %c0_6] : memref<32x1xf32, #tpu.memory_space<vmem>>, vector<32x1xf32>
    %7 = vector.broadcast %6 : vector<32x1xf32> to vector<32x128xf32>
    %8 = arith.addf %5, %7 : vector<32x128xf32>
    %cst_7 = arith.constant 0.000000e+00 : f32
    %9 = vector.broadcast %cst_7 : f32 to vector<32x128xf32>
    %10 = arith.subf %9, %8 : vector<32x128xf32>
    %11 = math.exp %10 : vector<32x128xf32>
    %cst_8 = arith.constant 1.000000e+00 : f32
    %12 = vector.broadcast %cst_8 : f32 to vector<32x128xf32>
    %13 = arith.addf %12, %11 : vector<32x128xf32>
    %cst_9 = arith.constant 1.000000e+00 : f32
    %14 = vector.broadcast %cst_9 : f32 to vector<32x128xf32>
    %15 = arith.divf %14, %13 : vector<32x128xf32>
    %16 = arith.mulf %8, %15 : vector<32x128xf32>
    %c0_10 = arith.constant 0 : index
    %c0_11 = arith.constant 0 : index
    %17 = vector.load %arg5[%c0_10, %c0_11] : memref<32x128xf32, #tpu.memory_space<vmem>>, vector<32x128xf32>
    tpu.vector_store %arg5[%c0_10, %c0_11], %16 {strides = array<i32>} : memref<32x128xf32, #tpu.memory_space<vmem>>, vector<32x128xf32>,
    return
  }
  func.func @transform_0(%arg0: i32) -> (i32, i32) {
    %c0_i32 = arith.constant 0 : i32
    %c0_i32_0 = arith.constant 0 : i32
    return %c0_i32, %arg0 : i32, i32
  }
  func.func @transform_1(%arg0: i32) -> (i32, i32) {
    %c0_i32 = arith.constant 0 : i32
    %c0_i32_0 = arith.constant 0 : i32
    %c0_i32_1 = arith.constant 0 : i32
    return %c0_i32, %c0_i32_0 : i32, i32
  }
  func.func @transform_2(%arg0: i32) -> (i32, i32) {
    %c0_i32 = arith.constant 0 : i32
    %c0_i32_0 = arith.constant 0 : i32
    %c0_i32_1 = arith.constant 0 : i32
    return %c0_i32, %c0_i32_0 : i32, i32
  }
  func.func @transform_3(%arg0: i32) -> (i32, i32) {
    %c0_i32 = arith.constant 0 : i32
    %c0_i32_0 = arith.constant 0 : i32
    %c0_i32_1 = arith.constant 0 : i32
    return %c0_i32, %c0_i32_0 : i32, i32
  }
  func.func @transform_4(%arg0: i32) -> (i32, i32) {
    %c0_i32 = arith.constant 0 : i32
    %c0_i32_0 = arith.constant 0 : i32
    return %c0_i32, %arg0 : i32, i32
  }
}

</mosaic_0001>

<bundles_post_ra>
// kernel: tpu_custom_call.1
= control target key start
LH: loop header
LB: loop body
LE: loop exit
PB: predicated region body
PF: predicated region fallthrough
CT: control target
= control target key end

     0   :  { %vm24_vm0 = vcmask 130048   ;;  %v298_v5 = vmov 0   ;;  %s385_s0 = inlined_call_operand.vmem [shape: f32[16,128], index: 0, kind: input, shape index: {}]   ;;  %s386_s1 = inlined_call_operand.vmem [shape: f32[32,16], index: 1, kind: input, shape index: {}]   ;;  %s387_s2 = inlined_call_operand.vmem [shape: f32[32,1], index: 2, kind: input, shape index: {}]   ;;  %s388_s3 = inlined_call_operand.vmem [shape: f32[32,1], index: 3, kind: input, shape index: {}]   ;;  %s389_s4 = inlined_call_operand.hbm [shape: f32[32,128], index: 4, kind: output, shape index: {}]  }
   0x1   :  { %v22_v0 = vld [vmem:[%s385_s0] sm:$0xff]  ;;  %v23_v1 = vld [vmem:[%s385_s0 + $0x8] sm:$0xff]  ;;  %v20_v4 = vld [vmem:[%s386_s1 + $0x10] sm:$0xff]  ;;  %257 = vset.pattern.permute.xlu1 %v298_v5  ;;  %256 = vset.pattern.permute.xlu0 %v298_v5 }
   0x2   :  { %v18_v2 = vld [vmem:[%s386_s1] sm:$0xff]  ;;  %v246_v3 = vpack.c.bf16 %v23_v1, %v22_v0  ;;  %243 = vmatprep.mubr.msk.f32.mxu1 %vm24_vm0, %v20_v4  ;;  %v124_v6 = vld [vmem:[%s387_s2 + $0x10] sm:$0xff]  ;;  %v19_v8 = vld [vmem:[%s386_s1 + $0x8] sm:$0xff] }
   0x3   :  { %240 = vmatprep.mubr.msk.f32.mxu0 %vm24_vm0, %v18_v2  ;;  %v122_v7 = vld [vmem:[%s387_s2] sm:$0xff]  ;;  %v21_v9 = vld [vmem:[%s386_s1 + $0x18] sm:$0xff] }
   0x4   :  { %247 = vmatprep.subr.bf16.mxu0 %v246_v3  ;;  %250 = vmatprep.subr.bf16.mxu1 %v246_v3 }
   0x5   :  { %249 = vmatpush3.bf16.msra.mxu0 %v246_v3  ;;  %251 = vmatpush3.bf16.msra.mxu1 %v246_v3 }
   0x6   :  { %9 = vsyncpa [#allocation3], 0  ;;  %138 = vperm.xlu1 %257, %v124_v6   ;;  %128 = vperm.xlu0 %256, %v122_v7   ;;  %v125_v10 = vld [vmem:[%s387_s2 + $0x18] sm:$0xff]  ;;  %v123_v11 = vld [vmem:[%s387_s2 + $0x8] sm:$0xff] }
   0x7   :  { %v151_v12 = vld [vmem:[%s388_s3 + $0x8] sm:$0xff]  ;;  %v150_v13 = vld [vmem:[%s388_s3] sm:$0xff]  ;;  %v153_v14 = vld [vmem:[%s388_s3 + $0x18] sm:$0xff] }
   0x8   :  { %241 = vmatmul.mubr.msk.f32.vlgmr.msra.gmra.mrb[0].mxu0 %vm24_vm0, %v19_v8  ;;  %244 = vmatmul.mubr.msk.f32.vlgmr.msra.gmra.mrb[0].mxu1 %vm24_vm0, %v21_v9  ;;  %v152_v15 = vld [vmem:[%s388_s3 + $0x10] sm:$0xff]  ;;  %s299_s3 = smov [#allocation2]  }
   0x9   :  { %s215_s14 = sshll.u32 %s299_s3, 4  ;;  %s216_s14 = int_to_ptr.vmem [resolvable:$true] %s215_s14 }
   0xa   :  { %143 = vperm.xlu1 %257, %v125_v10   ;;  %133 = vperm.xlu0 %256, %v123_v11   ;;  %s274_s15 = scalar_lea.vmem %s216_s14, 512  ;;  %p279_p1 = scmp.lt.s32.totalorder %s216_s14, %s216_s14 }
   0xb   :  { %p275_p0 = scmp.ne.s32.totalorder %s216_s14, %s274_s15  ;;  %p280_p2 = scmp.lt.s32.totalorder %s274_s15, %s274_s15 }
   0xd   :  { %p281_p3 = por %p280_p2, %p279_p1 }
   0xe   :  { %161 = vperm.xlu1 %257, %v151_v12   ;;  %156 = vperm.xlu0 %256, %v150_v13  }
   0xf   :  { %p282_p4 = pnand %p281_p3, %p275_p0 }
  0x12   :  { %171 = vperm.xlu1 %257, %v153_v14   ;;  %166 = vperm.xlu0 %256, %v152_v15  }
  0x85   :  { %v139_v16 = vpop.permute.xlu1 %138  ;;  %v129_v17 = vpop.permute.xlu0 %128 }
  0x89   :  { %v144_v18 = vpop.permute.xlu1 %143  ;;  %v134_v19 = vpop.permute.xlu0 %133 }
  0x8d   :  { %v162_v20 = vpop.permute.xlu1 %161  ;;  %v157_v21 = vpop.permute.xlu0 %156 }
  0x91   :  { %v172_v28 = vpop.permute.xlu1 %171  ;;  %v167_v31 = vpop.permute.xlu0 %166 }
  0xdb   :  { %v242_v22 = vpop.f32.mrb[0].mxu0  ;;  %v245_v23 = vpop.f32.mrb[0].mxu1 }
  0xdc   :  { %v147_v24 = vmul.f32 %v242_v22, %v134_v19  ;;  %v149_v25 = vmul.f32 %v245_v23, %v144_v18  ;;  %v103_v26 = vpop.f32.mrb[1].mxu0  ;;  %v113_v27 = vpop.f32.mrb[1].mxu1 }
  0xdd   :  { %v146_v29 = vmul.f32 %v129_v17, %v103_v26  ;;  %v148_v30 = vmul.f32 %v139_v16, %v113_v27 }
  0xde   :  { %v175_v32 = vadd.f32 %v162_v20, %v147_v24  ;;  %v177_v33 = vadd.f32 %v172_v28, %v149_v25 }
  0xdf   :  { %v174_v34 = vadd.f32 %v157_v21, %v146_v29  ;;  %v176_v35 = vadd.f32 %v167_v31, %v148_v30 }
  0xe0   :  { %v179_v36 = vsub.f32 0.0, %v175_v32  ;;  %v181_v37 = vsub.f32 0.0, %v177_v33 }
  0xe1   :  { %v178_v38 = vsub.f32 0.0, %v174_v34  ;;  %v180_v39 = vsub.f32 0.0, %v176_v35 }
  0xe2   :  { %v184_v40 = vmul.f32 1.442695, %v179_v36  ;;  %v188_v41 = vmul.f32 1.442695, %v181_v37 }
  0xe3   :  { %v182_v42 = vmul.f32 1.442695, %v178_v38  ;;  %v186_v43 = vmul.f32 1.442695, %v180_v39 }
  0xe4   :  { %258 = vpow2.f32 %v184_v40 }
  0xe5   :  { %260 = vpow2.f32 %v188_v41 }
  0xe6   :  { %262 = vpow2.f32 %v182_v42 }
  0xe7   :  { %264 = vpow2.f32 %v186_v43 }
  0xee   :  { %v259_v44 = vpop.eup %258 }
  0xef   :  { %v261_v45 = vpop.eup %260  ;;  %v191_v46 = vadd.f32 1.0, %v259_v44 }
  0xf0   :  { %v263_v47 = vpop.eup %262  ;;  %v193_v48 = vadd.f32 1.0, %v261_v45 }
  0xf1   :  { %v265_v49 = vpop.eup %264  ;;  %266 = vrcp.f32 %v191_v46  ;;  %v190_v50 = vadd.f32 1.0, %v263_v47 }
  0xf2   :  { %268 = vrcp.f32 %v193_v48  ;;  %v192_v51 = vadd.f32 1.0, %v265_v49 }
  0xf3   :  { %270 = vrcp.f32 %v190_v50 }
  0xf4   :  { %272 = vrcp.f32 %v192_v51 }
  0xfb   :  { %v267_v52 = vpop.eup %266 }
  0xfc   :  { %v269_v53 = vpop.eup %268  ;;  %v203_v54 = vmul.f32 %v267_v52, %v175_v32 }
  0xfd   :  { %v271_v55 = vpop.eup %270  ;;  %v205_v56 = vmul.f32 %v269_v53, %v177_v33 }
  0xfe   :  { %v273_v57 = vpop.eup %272  ;;  %207 = vst [vmem:[#allocation2 + $0x8] sm:$0xff] %v203_v54  ;;  %v202_v58 = vmul.f32 %v271_v55, %v174_v34 }
  0xff   :  { %209 = vst [vmem:[#allocation2 + $0x18] sm:$0xff] %v205_v56  ;;  %v204_v59 = vmul.f32 %v273_v57, %v176_v35 }
 0x100   :  { %206 = vst [vmem:[#allocation2] sm:$0xff] %v202_v58 }
 0x101   :  { %208 = vst [vmem:[#allocation2 + $0x10] sm:$0xff] %v204_v59 }
 0x102   :  { %285 = shalt.err (!%p282_p4)
}
 0x103   :  { %s286_s18 = scalar_lea.hbm %s389_s4, 512 }
 0x104   :  { %p287_p5 = scmp.ne.s32.totalorder %s389_s4, %s286_s18  ;;  %p290_p6 = scmp.lt.u32.totalorder %s286_s18, %s389_s4 }
 0x106   :  { %p292_p7 = pnand %p290_p6, %p287_p5 }
 0x108   :  { %295 = shalt.err (!%p292_p7)
}
 0x109   :  { %s300_s23 = smov 128   ;;  %s301_s24 = smov 8  }
 0x10a   :  { %221 = dma.vmem_to_hbm [thread:$0]  %s216_s14, 512, %s389_s4, [#allocation3], %s300_s23, %s300_s23, %s301_s24  }
 0x10b   :  { %296 = dma.done.wait [#allocation3], 512  }
 0x10c   :  { %297 = vsyncadd [#allocation3], 4294966784 }
 0x10d   :  { %225 = vsyncpa [#allocation3], 1 }

</bundles_post_ra>
